<compile_context>
chip_gen: v7x
topology: tpu7x:2x2x1
jax: 0.10.0
libtpu: 0.0.40
codegen_flags: <defaults>
</compile_context>

<pallas_src>
import numpy as np

import jax
import jax.numpy as jnp
from jax.experimental import pallas as pl
from jax.experimental.pallas import tpu as pltpu


# ---------------------------------------------------------------------------
# Kernel
# ---------------------------------------------------------------------------
def _down2_kernel(x_ref, m1_ref, m2_ref, sb_ref, out_ref, xpad_ref, mid_ref):
    """Fused maxpool2x2 + conv3x3(pad=1)+BN+ReLU + conv3x3(dil=2,pad=2)+BN+ReLU.

    Shapes (B = images per grid step; lanes fold (W, C)):
      x_ref    : (B, 2, 2, Hp, Wp*C_in)   bf16; axes 1,2 = pooling parities
      m1_ref   : (3, Wp*C_in,  Wp*C_out)  bf16 folded conv1 weights (per kh)
      m2_ref   : (3, Wp*C_out, Wp*C_out)  bf16 folded dilated-conv2 weights
      sb_ref   : (4, Wp*C_out)            f32 rows = [s1, b1, s2, b2]
      out_ref  : (B, Hp, Wp*C_out)        f32 lane-dense output
      xpad_ref : (B*(Hp+2), Wp*C_in)      f32 scratch, per-image H-pad = 1
      mid_ref  : (B*(Hp+4), Wp*C_out)     f32 scratch, per-image H-pad = 2
    """
    B, Hp, wcout = out_ref.shape
    P1, P2 = Hp + 2, Hp + 4          # per-image padded row strides
    Mp1, Mp2 = B * P1, B * P2

    # ---- fused MaxPool2d(2): three element-wise vreg maxes over the parities.
    x = x_ref[...]
    pooled = jnp.maximum(jnp.maximum(x[:, 0, 0], x[:, 0, 1]),
                         jnp.maximum(x[:, 1, 0], x[:, 1, 1]))   # (B, Hp, wcin)

    # ---- per-image H-pad=1 for conv1 (W padding is folded into the weights).
    # One full-tile zero store covers all border rows; each image interior is
    # one contiguous store (no small masked border stores -> v5e friendly).
    xpad_ref[...] = jnp.zeros_like(xpad_ref)
    for b in range(B):
        xpad_ref[b * P1 + 1:b * P1 + 1 + Hp, :] = pooled[b].astype(jnp.float32)

    # ---- conv1 (3x3, pad=1) + BN1 + ReLU: 3 bf16 matmuls with M = B*(Hp+2)-2.
    s1 = sb_ref[0:1, :]
    b1 = sb_ref[1:2, :]
    acc1 = jnp.zeros((Mp1 - 2, wcout), jnp.float32)
    for kh in range(3):
        acc1 = acc1 + jnp.dot(
            xpad_ref[kh:kh + Mp1 - 2, :].astype(jnp.bfloat16), m1_ref[kh],
            preferred_element_type=jnp.float32)
    z1 = jnp.maximum(acc1 * s1 + b1, 0.0)
    # z1 row b*P1 + h is (image b, row h); rows b*P1+Hp, b*P1+Hp+1 are junk
    # computed from the zero inter-image border rows and are never read.

    # ---- per-image H-pad=2 for the dilated conv.
    mid_ref[...] = jnp.zeros_like(mid_ref)
    for b in range(B):
        mid_ref[b * P2 + 2:b * P2 + 2 + Hp, :] = z1[b * P1:b * P1 + Hp]

    # ---- conv2 (3x3, dilation=2, pad=2, no bias) + BN2 + ReLU.
    s2 = sb_ref[2:3, :]
    b2 = sb_ref[3:4, :]
    acc2 = jnp.zeros((Mp2 - 4, wcout), jnp.float32)
    for kh in range(3):
        acc2 = acc2 + jnp.dot(
            mid_ref[2 * kh:2 * kh + Mp2 - 4, :].astype(jnp.bfloat16),
            m2_ref[kh], preferred_element_type=jnp.float32)
    y = jnp.maximum(acc2 * s2 + b2, 0.0)

    for b in range(B):
        out_ref[b] = y[b * P2:b * P2 + Hp].astype(out_ref.dtype)


# ---------------------------------------------------------------------------
# One-time host-side parameter folding (hoisted out of the per-call path)
# ---------------------------------------------------------------------------
def _fold_conv_weights(w, wp, dilation):
    """Fold a 3x3 HWIO conv weight into per-kh lane-folded matmul weights.

    Returns (3, wp*C_in, wp*C_out) with
      M[kh, wi*C_in + ci, wo*C_out + co] = w[kh, kw, ci, co],
      wi = wo + dilation*(kw-1); out-of-range wi rows are absent, which
      implements the zero W padding (requires padding == dilation).
    This is block-structured (Wp-redundant); it is only sensible while
    Wp*C_out is around one vreg lane row.  For big channel counts use
    9 per-(kh,kw) (C_in, C_out) matmuls on an (H*W, C) layout instead.
    """
    kh_sz, kw_sz, cin, cout = w.shape
    ind = np.zeros((kw_sz, wp, wp), np.float32)
    for kw in range(kw_sz):
        for wo in range(wp):
            wi = wo + dilation * (kw - kw_sz // 2)
            if 0 <= wi < wp:
                ind[kw, wi, wo] = 1.0
    m = np.einsum('xuw,hxio->huiwo', ind, w)
    return m.reshape(kh_sz, wp * cin, wp * cout)


def prepare_params(params, wp, weight_dtype=jnp.bfloat16):
    """Fold conv weights + (eval-mode) BN into kernel operands, once, on host.

    Weights are emitted in bf16 (MXU-native on v5e/v6e/v7x; halves their
    HBM/VMEM footprint); scale/bias stay f32 and are fused into one slab.
    """
    w1, s1, b1, w2, s2, b2 = params
    m1 = jnp.asarray(_fold_conv_weights(np.asarray(w1, np.float32), wp, 1),
                     weight_dtype)
    m2 = jnp.asarray(_fold_conv_weights(np.asarray(w2, np.float32), wp, 2),
                     weight_dtype)
    sb = np.stack([np.tile(np.asarray(s1, np.float32), wp),
                   np.tile(np.asarray(b1, np.float32), wp),
                   np.tile(np.asarray(s2, np.float32), wp),
                   np.tile(np.asarray(b2, np.float32), wp)], axis=0)
    return m1, m2, jnp.asarray(sb, jnp.float32)


# ---------------------------------------------------------------------------
# Forward wrapper
# ---------------------------------------------------------------------------
def _pick_batch_block(n, hp, target_rows=256, max_block=32):
    """Images per grid step: push B*Hp toward target_rows (fills the MXU M
    dim / makes DMAs and stores large slabs), keep >= 2 grid steps so v7x's
    second TensorCore gets work, and require B | N."""
    b = max(1, min(n, max_block, -(-target_rows // hp)))
    while b > 1 and n // b < 2:
        b -= 1
    while n % b != 0:
        b -= 1
    return b


def down2_forward(x_nchw, folded_params, batch_block=None):
    """Fused down2 forward.  Input/output are NCHW like PyTorch.

    `folded_params` must come from `prepare_params` (folding runs once, not
    per call).  H, W must be even.
    """
    m1, m2, sb = folded_params
    N, C_in, H, W = x_nchw.shape
    assert H % 2 == 0 and W % 2 == 0, "down2 requires even H, W"
    Hp, Wp = H // 2, W // 2
    wcin = Wp * C_in
    wcout = m1.shape[2]
    C_out = wcout // Wp
    assert m1.shape == (3, wcin, wcout) and m2.shape == (3, wcout, wcout)

    B = batch_block or _pick_batch_block(N, Hp)
    assert N % B == 0

    # Layout glue: NCHW -> (N, 2, 2, Hp, Wp*C_in) in bf16, one fused pass.
    # Pooling-window parities become leading axes so the in-kernel maxpool is
    # 3 element-wise maxes.  In a full UNet, keep this lane-folded layout
    # across consecutive blocks instead of converting back to NCHW each time.
    x_arr = jnp.transpose(
        x_nchw.astype(jnp.bfloat16).reshape(N, C_in, Hp, 2, Wp, 2),
        (0, 3, 5, 2, 4, 1)).reshape(N, 2, 2, Hp, wcin)

    # m1/m2/sb have constant index maps so they are DMA'd only once per core;
    # at production sizes also single-buffer them (pipeline_mode=pl.Buffered(1))
    # to halve their VMEM residency under v7x's 64 MiB.
    out_f = pl.pallas_call(
        _down2_kernel,
        out_shape=jax.ShapeDtypeStruct((N, Hp, wcout), jnp.float32),
        grid_spec=pltpu.PrefetchScalarGridSpec(
            num_scalar_prefetch=0,
            grid=(N // B,),
            in_specs=[
                pl.BlockSpec((B, 2, 2, Hp, wcin), lambda n: (n, 0, 0, 0, 0)),
                pl.BlockSpec((3, wcin, wcout), lambda n: (0, 0, 0)),
                pl.BlockSpec((3, wcout, wcout), lambda n: (0, 0, 0)),
                pl.BlockSpec((4, wcout), lambda n: (0, 0)),
            ],
            out_specs=pl.BlockSpec((B, Hp, wcout), lambda n: (n, 0, 0)),
            scratch_shapes=[
                pltpu.VMEM((B * (Hp + 2), wcin), jnp.float32),
                pltpu.VMEM((B * (Hp + 4), wcout), jnp.float32),
            ],
        ),
        compiler_params=pltpu.CompilerParams(
            dimension_semantics=("parallel",),
            vmem_limit_bytes=48 * 1024 * 1024),
    )(x_arr, m1, m2, sb)

    # Layout glue back to NCHW (reshape is free; transpose is one HBM pass).
    return jnp.transpose(out_f.reshape(N, Hp, Wp, C_out), (0, 3, 1, 2))


# ---------------------------------------------------------------------------
# Synthetic parameters + pure-JAX reference
# ---------------------------------------------------------------------------
def make_params(key, in_ch, out_ch, eps=1e-5):
    """Deterministic synthetic parameters; BN folded to scale/bias."""
    # TODO(synk): BatchNorm2d is implemented with running statistics
    # (inference/eval mode); training-mode batch statistics are not computed.
    ks = jax.random.split(key, 10)
    w1 = jax.random.normal(ks[0], (3, 3, in_ch, out_ch), jnp.float32) * 0.1
    bias1 = jax.random.normal(ks[1], (out_ch,), jnp.float32) * 0.1
    gamma1 = 1.0 + 0.1 * jax.random.normal(ks[2], (out_ch,), jnp.float32)
    beta1 = 0.1 * jax.random.normal(ks[3], (out_ch,), jnp.float32)
    mean1 = 0.1 * jax.random.normal(ks[4], (out_ch,), jnp.float32)
    var1 = jax.random.uniform(ks[5], (out_ch,), jnp.float32, 0.5, 1.5)
    w2 = jax.random.normal(ks[6], (3, 3, out_ch, out_ch), jnp.float32) * 0.1
    gamma2 = 1.0 + 0.1 * jax.random.normal(ks[7], (out_ch,), jnp.float32)
    beta2 = 0.1 * jax.random.normal(ks[8], (out_ch,), jnp.float32)
    mean2 = 0.1 * jax.random.normal(ks[9], (out_ch,), jnp.float32)
    var2 = jnp.ones((out_ch,), jnp.float32)

    s1 = gamma1 / jnp.sqrt(var1 + eps)
    b1 = (bias1 - mean1) * s1 + beta1          # conv1 bias folded into BN bias
    s2 = gamma2 / jnp.sqrt(var2 + eps)
    b2 = beta2 - mean2 * s2
    return (w1, s1, b1, w2, s2, b2)


def reference_forward(x_nchw, params):
    """Pure-JAX f32 reference (maxpool + lax.conv) for correctness checking."""
    (w1, s1, b1, w2, s2, b2) = params
    N, C, H, W = x_nchw.shape
    x = jnp.transpose(x_nchw, (0, 2, 3, 1)).astype(jnp.float32)
    x = x.reshape(N, H // 2, 2, W // 2, 2, C).max(axis=(2, 4))   # MaxPool2d(2)
    dn = ('NHWC', 'HWIO', 'NHWC')
    y = jax.lax.conv_general_dilated(x, w1, (1, 1), ((1, 1), (1, 1)),
                                     dimension_numbers=dn,
                                     precision=jax.lax.Precision.HIGHEST)
    y = jnp.maximum(y * s1 + b1, 0.0)
    y = jax.lax.conv_general_dilated(y, w2, (1, 1), ((2, 2), (2, 2)),
                                     rhs_dilation=(2, 2), dimension_numbers=dn,
                                     precision=jax.lax.Precision.HIGHEST)
    y = jnp.maximum(y * s2 + b2, 0.0)
    return jnp.transpose(y, (0, 3, 1, 2))


if __name__ == "__main__":
    # Small demo shapes: batch=8 so the batch-blocked grid has 2 steps of
    # B=4 images (M = B*Hp = 32 rows per matmul); in_ch=4, out_ch=16,
    # spatial 16 -> pooled 8x8 and folded output width Wp*C_out = 128 lanes.
    N, in_ch, out_ch, H, W = 8, 4, 16, 16, 16
    key = jax.random.PRNGKey(0)
    kx, kp = jax.random.split(key)
    x = jax.random.normal(kx, (N, in_ch, H, W), jnp.float32)
    params = make_params(kp, in_ch, out_ch)
    folded = prepare_params(params, W // 2)      # hoisted, one-time folding

    out = jax.block_until_ready(down2_forward(x, folded))
    ref = jax.block_until_ready(reference_forward(x, params))

    assert out.shape == (N, out_ch, H // 2, W // 2), out.shape
    # Kernel uses bf16 MXU operands with f32 accumulation; reference is f32
    # at HIGHEST precision, so allow bf16-level tolerance.
    err = float(jnp.max(jnp.abs(out - ref)))
    assert jnp.allclose(out, ref, atol=6e-2, rtol=6e-2), err

    print("KERNEL_OK")
</pallas_src>

<mosaic_0001>
module attributes {stable_mosaic.version = 11 : i64} {
  func.func @_down2_kernel(%arg0: i32, %arg1: memref<4x2x2x8x32xbf16, #tpu.memory_space<vmem>>, %arg2: memref<3x32x128xbf16, #tpu.memory_space<vmem>>, %arg3: memref<3x128x128xbf16, #tpu.memory_space<vmem>>, %arg4: memref<4x128xf32, #tpu.memory_space<vmem>>, %arg5: memref<4x8x128xf32, #tpu.memory_space<vmem>>, %arg6: memref<40x32xf32, #tpu.memory_space<vmem>>, %arg7: memref<48x128xf32, #tpu.memory_space<vmem>>) attributes {dimension_semantics = [#tpu.dimension_semantics<parallel>], iteration_bounds = array<i64: 2>, scalar_prefetch = 0 : i64, scratch_operands = 2 : i64, tpu.core_type = #tpu.core_type<tc>, window_params = [{transform_indices = @transform_0, window_bounds = array<i64: 4, 2, 2, 8, 32>}, {pipeline_mode = #tpu.pipeline_mode<synchronous>, transform_indices = @transform_1, window_bounds = array<i64: 3, 32, 128>}, {pipeline_mode = #tpu.pipeline_mode<synchronous>, transform_indices = @transform_2, window_bounds = array<i64: 3, 128, 128>}, {pipeline_mode = #tpu.pipeline_mode<synchronous>, transform_indices = @transform_3, window_bounds = array<i64: 4, 128>}, {transform_indices = @transform_4, window_bounds = array<i64: 4, 8, 128>}]} {
    %c0 = arith.constant 0 : index
    %c0_0 = arith.constant 0 : index
    %c0_1 = arith.constant 0 : index
    %c0_2 = arith.constant 0 : index
    %c0_3 = arith.constant 0 : index
    %0 = vector.load %arg1[%c0, %c0_0, %c0_1, %c0_2, %c0_3] : memref<4x2x2x8x32xbf16, #tpu.memory_space<vmem>>, vector<4x2x2x8x32xbf16>
    %1 = vector.extract_strided_slice %0 {offsets = [0, 0, 0, 0, 0], sizes = [4, 1, 1, 8, 32], strides = [1, 1, 1, 1, 1]} : vector<4x2x2x8x32xbf16> to vector<4x1x1x8x32xbf16>
    %2 = vector.shape_cast %1 : vector<4x1x1x8x32xbf16> to vector<4x8x32xbf16>
    %3 = vector.extract_strided_slice %0 {offsets = [0, 0, 1, 0, 0], sizes = [4, 1, 1, 8, 32], strides = [1, 1, 1, 1, 1]} : vector<4x2x2x8x32xbf16> to vector<4x1x1x8x32xbf16>
    %4 = vector.shape_cast %3 : vector<4x1x1x8x32xbf16> to vector<4x8x32xbf16>
    %5 = arith.maximumf %2, %4 : vector<4x8x32xbf16>
    %6 = vector.extract_strided_slice %0 {offsets = [0, 1, 0, 0, 0], sizes = [4, 1, 1, 8, 32], strides = [1, 1, 1, 1, 1]} : vector<4x2x2x8x32xbf16> to vector<4x1x1x8x32xbf16>
    %7 = vector.shape_cast %6 : vector<4x1x1x8x32xbf16> to vector<4x8x32xbf16>
    %8 = vector.extract_strided_slice %0 {offsets = [0, 1, 1, 0, 0], sizes = [4, 1, 1, 8, 32], strides = [1, 1, 1, 1, 1]} : vector<4x2x2x8x32xbf16> to vector<4x1x1x8x32xbf16>
    %9 = vector.shape_cast %8 : vector<4x1x1x8x32xbf16> to vector<4x8x32xbf16>
    %10 = arith.maximumf %7, %9 : vector<4x8x32xbf16>
    %11 = arith.maximumf %5, %10 : vector<4x8x32xbf16>
    %cst = arith.constant 0.000000e+00 : f32
    %12 = vector.broadcast %cst : f32 to vector<40x32xf32>
    %c0_4 = arith.constant 0 : index
    %c0_5 = arith.constant 0 : index
    %13 = vector.load %arg6[%c0_4, %c0_5] : memref<40x32xf32, #tpu.memory_space<vmem>>, vector<40x32xf32>
    tpu.vector_store %arg6[%c0_4, %c0_5], %12 {strides = array<i32>} : memref<40x32xf32, #tpu.memory_space<vmem>>, vector<40x32xf32>,
    %14 = vector.extract_strided_slice %11 {offsets = [0, 0, 0], sizes = [1, 8, 32], strides = [1, 1, 1]} : vector<4x8x32xbf16> to vector<1x8x32xbf16>
    %15 = vector.shape_cast %14 : vector<1x8x32xbf16> to vector<8x32xbf16>
    %16 = arith.extf %15 : vector<8x32xbf16> to vector<8x32xf32>
    %c1 = arith.constant 1 : index
    %c0_6 = arith.constant 0 : index
    %17 = vector.load %arg6[%c1, %c0_6] : memref<40x32xf32, #tpu.memory_space<vmem>>, vector<8x32xf32>
    tpu.vector_store %arg6[%c1, %c0_6], %16 {strides = array<i32>} : memref<40x32xf32, #tpu.memory_space<vmem>>, vector<8x32xf32>,
    %18 = vector.extract_strided_slice %11 {offsets = [1, 0, 0], sizes = [1, 8, 32], strides = [1, 1, 1]} : vector<4x8x32xbf16> to vector<1x8x32xbf16>
    %19 = vector.shape_cast %18 : vector<1x8x32xbf16> to vector<8x32xbf16>
    %20 = arith.extf %19 : vector<8x32xbf16> to vector<8x32xf32>
    %c11 = arith.constant 11 : index
    %c0_7 = arith.constant 0 : index
    %21 = vector.load %arg6[%c11, %c0_7] : memref<40x32xf32, #tpu.memory_space<vmem>>, vector<8x32xf32>
    tpu.vector_store %arg6[%c11, %c0_7], %20 {strides = array<i32>} : memref<40x32xf32, #tpu.memory_space<vmem>>, vector<8x32xf32>,
    %22 = vector.extract_strided_slice %11 {offsets = [2, 0, 0], sizes = [1, 8, 32], strides = [1, 1, 1]} : vector<4x8x32xbf16> to vector<1x8x32xbf16>
    %23 = vector.shape_cast %22 : vector<1x8x32xbf16> to vector<8x32xbf16>
    %24 = arith.extf %23 : vector<8x32xbf16> to vector<8x32xf32>
    %c21 = arith.constant 21 : index
    %c0_8 = arith.constant 0 : index
    %25 = vector.load %arg6[%c21, %c0_8] : memref<40x32xf32, #tpu.memory_space<vmem>>, vector<8x32xf32>
    tpu.vector_store %arg6[%c21, %c0_8], %24 {strides = array<i32>} : memref<40x32xf32, #tpu.memory_space<vmem>>, vector<8x32xf32>,
    %26 = vector.extract_strided_slice %11 {offsets = [3, 0, 0], sizes = [1, 8, 32], strides = [1, 1, 1]} : vector<4x8x32xbf16> to vector<1x8x32xbf16>
    %27 = vector.shape_cast %26 : vector<1x8x32xbf16> to vector<8x32xbf16>
    %28 = arith.extf %27 : vector<8x32xbf16> to vector<8x32xf32>
    %c31 = arith.constant 31 : index
    %c0_9 = arith.constant 0 : index
    %29 = vector.load %arg6[%c31, %c0_9] : memref<40x32xf32, #tpu.memory_space<vmem>>, vector<8x32xf32>
    tpu.vector_store %arg6[%c31, %c0_9], %28 {strides = array<i32>} : memref<40x32xf32, #tpu.memory_space<vmem>>, vector<8x32xf32>,
    %c0_10 = arith.constant 0 : index
    %c0_11 = arith.constant 0 : index
    %30 = vector.load %arg4[%c0_10, %c0_11] : memref<4x128xf32, #tpu.memory_space<vmem>>, vector<1x128xf32>
    %c1_12 = arith.constant 1 : index
    %c0_13 = arith.constant 0 : index
    %31 = vector.load %arg4[%c1_12, %c0_13] : memref<4x128xf32, #tpu.memory_space<vmem>>, vector<1x128xf32>
    %cst_14 = arith.constant 0.000000e+00 : f32
    %32 = vector.broadcast %cst_14 : f32 to vector<38x128xf32>
    %c0_15 = arith.constant 0 : index
    %c0_16 = arith.constant 0 : index
    %33 = vector.load %arg6[%c0_15, %c0_16] : memref<40x32xf32, #tpu.memory_space<vmem>>, vector<38x32xf32>
    %34 = arith.truncf %33 : vector<38x32xf32> to vector<38x32xbf16>
    %c0_17 = arith.constant 0 : index
    %c0_18 = arith.constant 0 : index
    %c0_19 = arith.constant 0 : index
    %35 = vector.load %arg2[%c0_17, %c0_18, %c0_19] : memref<3x32x128xbf16, #tpu.memory_space<vmem>>, vector<1x32x128xbf16>
    %36 = vector.shape_cast %35 : vector<1x32x128xbf16> to vector<32x128xbf16>
    %cst_20 = arith.constant dense<0.000000e+00> : vector<38x128xf32>
    %37 = tpu.matmul %34, %36, %cst_20 {dimension_numbers = #tpu.dot_dimension_numbers<[1], [0], [0], [1], [0, 0, 1, 1], [], []>} : vector<38x32xbf16>, vector<32x128xbf16>, vector<38x128xf32> -> vector<38x128xf32>
    %38 = arith.addf %32, %37 : vector<38x128xf32>
    %c1_21 = arith.constant 1 : index
    %c0_22 = arith.constant 0 : index
    %39 = vector.load %arg6[%c1_21, %c0_22] : memref<40x32xf32, #tpu.memory_space<vmem>>, vector<38x32xf32>
    %40 = arith.truncf %39 : vector<38x32xf32> to vector<38x32xbf16>
    %c1_23 = arith.constant 1 : index
    %c0_24 = arith.constant 0 : index
    %c0_25 = arith.constant 0 : index
    %41 = vector.load %arg2[%c1_23, %c0_24, %c0_25] : memref<3x32x128xbf16, #tpu.memory_space<vmem>>, vector<1x32x128xbf16>
    %42 = vector.shape_cast %41 : vector<1x32x128xbf16> to vector<32x128xbf16>
    %cst_26 = arith.constant dense<0.000000e+00> : vector<38x128xf32>
    %43 = tpu.matmul %40, %42, %cst_26 {dimension_numbers = #tpu.dot_dimension_numbers<[1], [0], [0], [1], [0, 0, 1, 1], [], []>} : vector<38x32xbf16>, vector<32x128xbf16>, vector<38x128xf32> -> vector<38x128xf32>
    %44 = arith.addf %38, %43 : vector<38x128xf32>
    %c2 = arith.constant 2 : index
    %c0_27 = arith.constant 0 : index
    %45 = vector.load %arg6[%c2, %c0_27] : memref<40x32xf32, #tpu.memory_space<vmem>>, vector<38x32xf32>
    %46 = arith.truncf %45 : vector<38x32xf32> to vector<38x32xbf16>
    %c2_28 = arith.constant 2 : index
    %c0_29 = arith.constant 0 : index
    %c0_30 = arith.constant 0 : index
    %47 = vector.load %arg2[%c2_28, %c0_29, %c0_30] : memref<3x32x128xbf16, #tpu.memory_space<vmem>>, vector<1x32x128xbf16>
    %48 = vector.shape_cast %47 : vector<1x32x128xbf16> to vector<32x128xbf16>
    %cst_31 = arith.constant dense<0.000000e+00> : vector<38x128xf32>
    %49 = tpu.matmul %46, %48, %cst_31 {dimension_numbers = #tpu.dot_dimension_numbers<[1], [0], [0], [1], [0, 0, 1, 1], [], []>} : vector<38x32xbf16>, vector<32x128xbf16>, vector<38x128xf32> -> vector<38x128xf32>
    %50 = arith.addf %44, %49 : vector<38x128xf32>
    %51 = vector.broadcast %30 : vector<1x128xf32> to vector<38x128xf32>
    %52 = arith.mulf %50, %51 : vector<38x128xf32>
    %53 = vector.broadcast %31 : vector<1x128xf32> to vector<38x128xf32>
    %54 = arith.addf %52, %53 : vector<38x128xf32>
    %cst_32 = arith.constant 0.000000e+00 : f32
    %55 = vector.broadcast %cst_32 : f32 to vector<38x128xf32>
    %56 = arith.maximumf %54, %55 : vector<38x128xf32>
    %cst_33 = arith.constant 0.000000e+00 : f32
    %57 = vector.broadcast %cst_33 : f32 to vector<48x128xf32>
    %c0_34 = arith.constant 0 : index
    %c0_35 = arith.constant 0 : index
    %58 = vector.load %arg7[%c0_34, %c0_35] : memref<48x128xf32, #tpu.memory_space<vmem>>, vector<48x128xf32>
    tpu.vector_store %arg7[%c0_34, %c0_35], %57 {strides = array<i32>} : memref<48x128xf32, #tpu.memory_space<vmem>>, vector<48x128xf32>,
    %59 = vector.extract_strided_slice %56 {offsets = [0, 0], sizes = [8, 128], strides = [1, 1]} : vector<38x128xf32> to vector<8x128xf32>
    %c2_36 = arith.constant 2 : index
    %c0_37 = arith.constant 0 : index
    %60 = vector.load %arg7[%c2_36, %c0_37] : memref<48x128xf32, #tpu.memory_space<vmem>>, vector<8x128xf32>
    tpu.vector_store %arg7[%c2_36, %c0_37], %59 {strides = array<i32>} : memref<48x128xf32, #tpu.memory_space<vmem>>, vector<8x128xf32>,
    %61 = vector.extract_strided_slice %56 {offsets = [10, 0], sizes = [8, 128], strides = [1, 1]} : vector<38x128xf32> to vector<8x128xf32>
    %c14 = arith.constant 14 : index
    %c0_38 = arith.constant 0 : index
    %62 = vector.load %arg7[%c14, %c0_38] : memref<48x128xf32, #tpu.memory_space<vmem>>, vector<8x128xf32>
    tpu.vector_store %arg7[%c14, %c0_38], %61 {strides = array<i32>} : memref<48x128xf32, #tpu.memory_space<vmem>>, vector<8x128xf32>,
    %63 = vector.extract_strided_slice %56 {offsets = [20, 0], sizes = [8, 128], strides = [1, 1]} : vector<38x128xf32> to vector<8x128xf32>
    %c26 = arith.constant 26 : index
    %c0_39 = arith.constant 0 : index
    %64 = vector.load %arg7[%c26, %c0_39] : memref<48x128xf32, #tpu.memory_space<vmem>>, vector<8x128xf32>
    tpu.vector_store %arg7[%c26, %c0_39], %63 {strides = array<i32>} : memref<48x128xf32, #tpu.memory_space<vmem>>, vector<8x128xf32>,
    %65 = vector.extract_strided_slice %56 {offsets = [30, 0], sizes = [8, 128], strides = [1, 1]} : vector<38x128xf32> to vector<8x128xf32>
    %c38 = arith.constant 38 : index
    %c0_40 = arith.constant 0 : index
    %66 = vector.load %arg7[%c38, %c0_40] : memref<48x128xf32, #tpu.memory_space<vmem>>, vector<8x128xf32>
    tpu.vector_store %arg7[%c38, %c0_40], %65 {strides = array<i32>} : memref<48x128xf32, #tpu.memory_space<vmem>>, vector<8x128xf32>,
    %c2_41 = arith.constant 2 : index
    %c0_42 = arith.constant 0 : index
    %67 = vector.load %arg4[%c2_41, %c0_42] : memref<4x128xf32, #tpu.memory_space<vmem>>, vector<1x128xf32>
    %c3 = arith.constant 3 : index
    %c0_43 = arith.constant 0 : index
    %68 = vector.load %arg4[%c3, %c0_43] : memref<4x128xf32, #tpu.memory_space<vmem>>, vector<1x128xf32>
    %cst_44 = arith.constant 0.000000e+00 : f32
    %69 = vector.broadcast %cst_44 : f32 to vector<44x128xf32>
    %c0_45 = arith.constant 0 : index
    %c0_46 = arith.constant 0 : index
    %70 = vector.load %arg7[%c0_45, %c0_46] : memref<48x128xf32, #tpu.memory_space<vmem>>, vector<44x128xf32>
    %71 = arith.truncf %70 : vector<44x128xf32> to vector<44x128xbf16>
    %c0_47 = arith.constant 0 : index
    %c0_48 = arith.constant 0 : index
    %c0_49 = arith.constant 0 : index
    %72 = vector.load %arg3[%c0_47, %c0_48, %c0_49] : memref<3x128x128xbf16, #tpu.memory_space<vmem>>, vector<1x128x128xbf16>
    %73 = vector.shape_cast %72 : vector<1x128x128xbf16> to vector<128x128xbf16>
    %cst_50 = arith.constant dense<0.000000e+00> : vector<44x128xf32>
    %74 = tpu.matmul %71, %73, %cst_50 {dimension_numbers = #tpu.dot_dimension_numbers<[1], [0], [0], [1], [0, 0, 1, 1], [], []>} : vector<44x128xbf16>, vector<128x128xbf16>, vector<44x128xf32> -> vector<44x128xf32>
    %75 = arith.addf %69, %74 : vector<44x128xf32>
    %c2_51 = arith.constant 2 : index
    %c0_52 = arith.constant 0 : index
    %76 = vector.load %arg7[%c2_51, %c0_52] : memref<48x128xf32, #tpu.memory_space<vmem>>, vector<44x128xf32>
    %77 = arith.truncf %76 : vector<44x128xf32> to vector<44x128xbf16>
    %c1_53 = arith.constant 1 : index
    %c0_54 = arith.constant 0 : index
    %c0_55 = arith.constant 0 : index
    %78 = vector.load %arg3[%c1_53, %c0_54, %c0_55] : memref<3x128x128xbf16, #tpu.memory_space<vmem>>, vector<1x128x128xbf16>
    %79 = vector.shape_cast %78 : vector<1x128x128xbf16> to vector<128x128xbf16>
    %cst_56 = arith.constant dense<0.000000e+00> : vector<44x128xf32>
    %80 = tpu.matmul %77, %79, %cst_56 {dimension_numbers = #tpu.dot_dimension_numbers<[1], [0], [0], [1], [0, 0, 1, 1], [], []>} : vector<44x128xbf16>, vector<128x128xbf16>, vector<44x128xf32> -> vector<44x128xf32>
    %81 = arith.addf %75, %80 : vector<44x128xf32>
    %c4 = arith.constant 4 : index
    %c0_57 = arith.constant 0 : index
    %82 = vector.load %arg7[%c4, %c0_57] : memref<48x128xf32, #tpu.memory_space<vmem>>, vector<44x128xf32>
    %83 = arith.truncf %82 : vector<44x128xf32> to vector<44x128xbf16>
    %c2_58 = arith.constant 2 : index
    %c0_59 = arith.constant 0 : index
    %c0_60 = arith.constant 0 : index
    %84 = vector.load %arg3[%c2_58, %c0_59, %c0_60] : memref<3x128x128xbf16, #tpu.memory_space<vmem>>, vector<1x128x128xbf16>
    %85 = vector.shape_cast %84 : vector<1x128x128xbf16> to vector<128x128xbf16>
    %cst_61 = arith.constant dense<0.000000e+00> : vector<44x128xf32>
    %86 = tpu.matmul %83, %85, %cst_61 {dimension_numbers = #tpu.dot_dimension_numbers<[1], [0], [0], [1], [0, 0, 1, 1], [], []>} : vector<44x128xbf16>, vector<128x128xbf16>, vector<44x128xf32> -> vector<44x128xf32>
    %87 = arith.addf %81, %86 : vector<44x128xf32>
    %88 = vector.broadcast %67 : vector<1x128xf32> to vector<44x128xf32>
    %89 = arith.mulf %87, %88 : vector<44x128xf32>
    %90 = vector.broadcast %68 : vector<1x128xf32> to vector<44x128xf32>
    %91 = arith.addf %89, %90 : vector<44x128xf32>
    %cst_62 = arith.constant 0.000000e+00 : f32
    %92 = vector.broadcast %cst_62 : f32 to vector<44x128xf32>
    %93 = arith.maximumf %91, %92 : vector<44x128xf32>
    %94 = vector.extract_strided_slice %93 {offsets = [0, 0], sizes = [8, 128], strides = [1, 1]} : vector<44x128xf32> to vector<8x128xf32>
    %c0_63 = arith.constant 0 : index
    %c0_64 = arith.constant 0 : index
    %c0_65 = arith.constant 0 : index
    %95 = vector.load %arg5[%c0_63, %c0_64, %c0_65] : memref<4x8x128xf32, #tpu.memory_space<vmem>>, vector<1x8x128xf32>
    %96 = vector.shape_cast %95 : vector<1x8x128xf32> to vector<8x128xf32>
    %97 = vector.shape_cast %94 : vector<8x128xf32> to vector<1x8x128xf32>
    tpu.vector_store %arg5[%c0_63, %c0_64, %c0_65], %97 {strides = array<i32>} : memref<4x8x128xf32, #tpu.memory_space<vmem>>, vector<1x8x128xf32>,
    %98 = vector.extract_strided_slice %93 {offsets = [12, 0], sizes = [8, 128], strides = [1, 1]} : vector<44x128xf32> to vector<8x128xf32>
    %c1_66 = arith.constant 1 : index
    %c0_67 = arith.constant 0 : index
    %c0_68 = arith.constant 0 : index
    %99 = vector.load %arg5[%c1_66, %c0_67, %c0_68] : memref<4x8x128xf32, #tpu.memory_space<vmem>>, vector<1x8x128xf32>
    %100 = vector.shape_cast %99 : vector<1x8x128xf32> to vector<8x128xf32>
    %101 = vector.shape_cast %98 : vector<8x128xf32> to vector<1x8x128xf32>
    tpu.vector_store %arg5[%c1_66, %c0_67, %c0_68], %101 {strides = array<i32>} : memref<4x8x128xf32, #tpu.memory_space<vmem>>, vector<1x8x128xf32>,
    %102 = vector.extract_strided_slice %93 {offsets = [24, 0], sizes = [8, 128], strides = [1, 1]} : vector<44x128xf32> to vector<8x128xf32>
    %c2_69 = arith.constant 2 : index
    %c0_70 = arith.constant 0 : index
    %c0_71 = arith.constant 0 : index
    %103 = vector.load %arg5[%c2_69, %c0_70, %c0_71] : memref<4x8x128xf32, #tpu.memory_space<vmem>>, vector<1x8x128xf32>
    %104 = vector.shape_cast %103 : vector<1x8x128xf32> to vector<8x128xf32>
    %105 = vector.shape_cast %102 : vector<8x128xf32> to vector<1x8x128xf32>
    tpu.vector_store %arg5[%c2_69, %c0_70, %c0_71], %105 {strides = array<i32>} : memref<4x8x128xf32, #tpu.memory_space<vmem>>, vector<1x8x128xf32>,
    %106 = vector.extract_strided_slice %93 {offsets = [36, 0], sizes = [8, 128], strides = [1, 1]} : vector<44x128xf32> to vector<8x128xf32>
    %c3_72 = arith.constant 3 : index
    %c0_73 = arith.constant 0 : index
    %c0_74 = arith.constant 0 : index
    %107 = vector.load %arg5[%c3_72, %c0_73, %c0_74] : memref<4x8x128xf32, #tpu.memory_space<vmem>>, vector<1x8x128xf32>
    %108 = vector.shape_cast %107 : vector<1x8x128xf32> to vector<8x128xf32>
    %109 = vector.shape_cast %106 : vector<8x128xf32> to vector<1x8x128xf32>
    tpu.vector_store %arg5[%c3_72, %c0_73, %c0_74], %109 {strides = array<i32>} : memref<4x8x128xf32, #tpu.memory_space<vmem>>, vector<1x8x128xf32>,
    return
  }
  func.func @transform_0(%arg0: i32) -> (i32, i32, i32, i32, i32) {
    %c0_i32 = arith.constant 0 : i32
    %c0_i32_0 = arith.constant 0 : i32
    %c0_i32_1 = arith.constant 0 : i32
    %c0_i32_2 = arith.constant 0 : i32
    %c0_i32_3 = arith.constant 0 : i32
    return %arg0, %c0_i32, %c0_i32_0, %c0_i32_1, %c0_i32_2 : i32, i32, i32, i32, i32
  }
  func.func @transform_1(%arg0: i32) -> (i32, i32, i32) {
    %c0_i32 = arith.constant 0 : i32
    %c0_i32_0 = arith.constant 0 : i32
    %c0_i32_1 = arith.constant 0 : i32
    %c0_i32_2 = arith.constant 0 : i32
    return %c0_i32, %c0_i32_0, %c0_i32_1 : i32, i32, i32
  }
  func.func @transform_2(%arg0: i32) -> (i32, i32, i32) {
    %c0_i32 = arith.constant 0 : i32
    %c0_i32_0 = arith.constant 0 : i32
    %c0_i32_1 = arith.constant 0 : i32
    %c0_i32_2 = arith.constant 0 : i32
    return %c0_i32, %c0_i32_0, %c0_i32_1 : i32, i32, i32
  }
  func.func @transform_3(%arg0: i32) -> (i32, i32) {
    %c0_i32 = arith.constant 0 : i32
    %c0_i32_0 = arith.constant 0 : i32
    %c0_i32_1 = arith.constant 0 : i32
    return %c0_i32, %c0_i32_0 : i32, i32
  }
  func.func @transform_4(%arg0: i32) -> (i32, i32, i32) {
    %c0_i32 = arith.constant 0 : i32
    %c0_i32_0 = arith.constant 0 : i32
    %c0_i32_1 = arith.constant 0 : i32
    return %arg0, %c0_i32, %c0_i32_0 : i32, i32, i32
  }
}

</mosaic_0001>

<bundles_post_ra>
// kernel: tpu_custom_call.1
= control target key start
LH: loop header
LB: loop body
LE: loop exit
PB: predicated region body
PF: predicated region fallthrough
CT: control target
= control target key end

     0   :  { %9 = vsyncpa [#allocation5], 0  ;;  %s2168_s0 = inlined_call_operand.hbm [shape: bf16[8,2,2,8,32], index: 0, kind: input, shape index: {}]   ;;  %s2169_s1 = inlined_call_operand.hbm [shape: bf16[3,32,128], index: 1, kind: input, shape index: {}]   ;;  %s2170_s2 = inlined_call_operand.hbm [shape: bf16[3,128,128], index: 2, kind: input, shape index: {}]   ;;  %s2171_s3 = inlined_call_operand.vmem [shape: f32[4,128], index: 3, kind: input, shape index: {}]   ;;  %s2172_s4 = inlined_call_operand.hbm [shape: f32[8,8,128], index: 4, kind: output, shape index: {}]  }
   0x1   :  { %11 = vsyncpa [#allocation5 + $0x1], 0 }
   0x2   :  { %12 = vsyncpa [#allocation8], 0 }
   0x3   :  { %13 = vsyncpa [#allocation6], 0 }
   0x4   :  { %15 = vsyncpa [#allocation6 + $0x1], 0  ;;  %s1750_s15 = smov 0   ;;  %s1752_s16 = smov 0  }
   0x5   :  { %s1754_s17 = smov 0   ;;  %s1756_s18 = smov 0  }
   0x6 LB: > { %s1771_s19 = sadd.s32 4294967295, %s1713_s18   ;;  %s1144_s20 = sadd.s32 4294967294, %s1713_s18   ;;  %s1713_s18 = sphi %s1756_s18, %s2192_s18   ;;  %s1709_s17 = sphi %s1754_s17, %s2191_s17   ;;  %s1705_s16 = sphi %s1752_s16, %s2190_s16   ;;  %s1701_s15 = sphi %s1750_s15, %s2189_s15  }
   0x7   : > { %p41_p0 = scmp.ne.s32.totalorder %s1705_s16, %s1701_s15  ;;  %p2173_p1 = scmp.eq.s32.totalorder %s1771_s19, 0 }
   0x8   : > { %p134_p3 = scmp.eq.s32.totalorder %s1144_s20, 1  ;;  %p1145_p5 = scmp.ge.s32.totalorder %s1713_s18, 1 }
   0x9   : > { %p1780_p4 = por %p2173_p1, %p41_p0  ;;  %p141_p7 = scmp.lt.s32.totalorder %s1713_s18, 3 }
   0xa   : > { %p1785_p6 = por %p134_p3, %p41_p0  ;;  %s1715_s24 = smov [#allocation7]  }
   0xb   : > { %s2176_s21 = scalar_select %p1780_p4, 1, 0 }
   0xc   : > { %s2177_s22 = scalar_select %p1785_p6, 1, 0 }
   0xd   : > { %p1790_p8 = pnand %p1145_p5, %p141_p7  ;;  %s153_s25 = sshll.u32 %s1715_s24, 4  ;;  %s1794_s25 = int_to_ptr.vmem [resolvable:$true] %s153_s25 }
   0xe   : > { %s1716_s27 = smov [#allocation9]   ;;  %s1557_s5 = scalar_lea.hbm %s2169_s1, 768 }
   0xf   : > { %p1466_p9 = pneg %p1790_p8  ;;  %s166_s28 = sshll.u32 %s1716_s27, 4  ;;  %s1805_s28 = int_to_ptr.vmem [resolvable:$true] %s166_s28 }
  0x10   : > { %p1558_p12 = scmp.ne.s32.totalorder %s2169_s1, %s1557_s5  ;;  %p1564_p5 = scmp.lt.u32.totalorder %s1557_s5, %s2169_s1 }
  0x11   : > { %p1801_p11 = pnand %p1466_p9, %p2173_p1 }
  0x13   : > { %p1559_p13 = pneg %p1801_p11 }
  0x15   : > { %p1560_p0 = pnand %p1559_p13, %p1558_p12 }
  0x17   : > { %p1561_p3 = pneg %p1560_p0 }
  0x19   : > { %p1566_p7 = pnand %p1564_p5, %p1561_p3 }
  0x1b   : > { %1569 = shalt.err (!%p1566_p7)
}
  0x1c   : > { %s1570_s10 = scalar_lea.vmem %s1794_s25, 768  ;;  %p1578_p2 = scmp.lt.s32.totalorder %s1794_s25, %s1794_s25 }
  0x1d   : > { %p1571_p9 = scmp.ne.s32.totalorder %s1794_s25, %s1570_s10  ;;  %p1579_p12 = scmp.lt.s32.totalorder %s1570_s10, %s1570_s10 }
  0x1f   : > { %p1573_p10 = pnand %p1571_p9, %p1559_p13  ;;  %p1580_p0 = por %p1579_p12, %p1578_p2 }
  0x21   : > { %p1574_p1 = pneg %p1573_p10 }
  0x23   : > { %p1581_p6 = pnand %p1580_p0, %p1574_p1 }
  0x25   : > { %1584 = shalt.err (!%p1581_p6)
}
  0x26   : > { %s1717_s11 = smov 64   ;;  %s1718_s12 = smov 4  }
  0x27   : > { %1469 = dma.hbm_to_vmem [thread:$0]  (!%p1801_p11), %s2169_s1, 768, %s1794_s25, [#allocation8], %s1717_s11, %s1717_s11, %s1718_s12  }
  0x28   : > { %s1585_s27 = scalar_lea.hbm %s2170_s2, 3072 }
  0x29   : > { %p1586_p1 = scmp.ne.s32.totalorder %s2170_s2, %s1585_s27  ;;  %p1592_p10 = scmp.lt.u32.totalorder %s1585_s27, %s2170_s2 }
  0x2b   : > { %p1588_p2 = pnand %p1586_p1, %p1559_p13 }
  0x2d   : > { %p1589_p6 = pneg %p1588_p2 }
  0x2f   : > { %p1594_p3 = pnand %p1592_p10, %p1589_p6 }
  0x31   : > { %1597 = shalt.err (!%p1594_p3)
}
  0x32   : > { %s1598_s25 = scalar_lea.vmem %s1805_s28, 3072  ;;  %p1606_p12 = scmp.lt.s32.totalorder %s1805_s28, %s1805_s28 }
  0x33   : > { %p1599_p5 = scmp.ne.s32.totalorder %s1805_s28, %s1598_s25  ;;  %p1607_p0 = scmp.lt.s32.totalorder %s1598_s25, %s1598_s25 }
  0x35   : > { %p1601_p7 = pnand %p1599_p5, %p1559_p13  ;;  %p1608_p1 = por %p1607_p0, %p1606_p12 }
  0x37   : > { %p1602_p9 = pneg %p1601_p7 }
  0x39   : > { %p1609_p2 = pnand %p1608_p1, %p1602_p9 }
  0x3b   : > { %1612 = shalt.err (!%p1609_p2)
}
  0x3c   : > { %1472 = dma.hbm_to_vmem [thread:$0]  (!%p1801_p11), %s2170_s2, 3072, %s1805_s28, [#allocation8], %s1717_s11, %s1717_s11, %s1718_s12  }
  0x3d   : > { %s1866_s26 = sadd.s32 1, %s1713_s18   ;;  %s28_s9 = sadd.s32 1, %s1709_s17 }
  0x3e   : > { %s25_s10 = ssub.s32 %s1713_s18, %s1866_s26  ;;  %p35_p13 = scmp.ne.s32.totalorder %s1709_s17, %s1705_s16 }
  0x3f   : > { %p26_p6 = scmp.eq.s32.totalorder %s25_s10, 0  ;;  %p36_p10 = scmp.eq.s32.totalorder %s1713_s18, 0 }
  0x40   : > { %p2180_p3 = scmp.eq.s32.totalorder %s1771_s19, 1  ;;  %p1483_p7 = scmp.lt.s32.totalorder %s1713_s18, 2 }
  0x41   : > { %s1882_s14 = scalar_select %p26_p6, %s1709_s17, %s28_s9  }
  0x42   : > { %p1876_p5 = por %p2180_p3, %p35_p13  ;;  %p37_p9 = por %p36_p10, %p35_p13 }
  0x43   : > { %s183_s20 = sand.u32 1, %s1709_s17   ;;  %s1212_s28 = sshll.u32 %s1713_s18, 10 }
  0x44   : > { %s2181_s13 = scalar_select %p1876_p5, 1, 0 }
  0x45   : > { %s1149_s24 = sshll.u32 %s183_s20, 6  ;;  %s1889_s30 = scalar_lea.hbm %s2168_s0, %s1212_s28 }
  0x46   : > { %s187_s5 = scalar_lea.vmem [#allocation4], %s1149_s24  ;;  %p1893_p11 = pnand %p1483_p7, %p37_p9 }
  0x47   : > { %s195_s6 = sshll.u32 %s187_s5, 4  ;;  %s1897_s7 = scalar_lea.sflag [#allocation5], %s183_s20  ;;  %s1891_s6 = int_to_ptr.vmem [resolvable:$true] %s195_s6 }
  0x48   : > { %s1613_s8 = scalar_lea.hbm %s1889_s30, 1024  ;;  %p1615_p0 = pneg %p1893_p11 }
  0x49   : > { %p1614_p12 = scmp.ne.s32.totalorder %s1889_s30, %s1613_s8  ;;  %s1618_s24 = scalar_lea.hbm %s2168_s0, 2048 }
  0x4a   : > { %p1619_p13 = scmp.lt.u32.totalorder %s1889_s30, %s2168_s0  ;;  %p1620_p6 = scmp.lt.u32.totalorder %s1618_s24, %s1613_s8 }
  0x4b   : > { %p1616_p1 = pnand %p1615_p0, %p1614_p12  ;;  %p1622_p3 = scmp.lt.u32.totalorder %s1613_s8, %s1889_s30 }
  0x4c   : > { %p1621_p10 = por %p1620_p6, %p1619_p13 }
  0x4d   : > { %p1617_p2 = pneg %p1616_p1 }
  0x4e   : > { %p1623_p7 = por %p1622_p3, %p1621_p10 }
  0x50   : > { %p1624_p9 = pnand %p1623_p7, %p1617_p2 }
  0x52   : > { %1627 = shalt.err (!%p1624_p9)
}
  0x53   : > { %s1628_s20 = scalar_lea.vmem %s1891_s6, 1024  ;;  %s1719_s29 = smov [#allocation4]  }
  0x54   : > { %p1629_p12 = scmp.ne.s32.totalorder %s1891_s6, %s1628_s20  ;;  %s1633_s5 = sshll.u32 %s1719_s29, 4  ;;  %s1634_s5 = int_to_ptr.vmem [resolvable:$false] %s1633_s5 }
  0x55   : > { %s1635_s9 = scalar_lea.vmem %s1634_s5, 2048  ;;  %p1636_p4 = scmp.lt.s32.totalorder %s1891_s6, %s1634_s5 }
  0x56   : > { %p1631_p1 = pnand %p1629_p12, %p1615_p0  ;;  %p1637_p13 = scmp.lt.s32.totalorder %s1635_s9, %s1628_s20 }
  0x58   : > { %p1632_p5 = pneg %p1631_p1  ;;  %p1638_p6 = por %p1637_p13, %p1636_p4 }
  0x5a   : > { %p1639_p10 = pnand %p1638_p6, %p1632_p5 }
  0x5c   : > { %1642 = shalt.err (!%p1639_p10)
}
  0x5d   : > { %1476 = dma.hbm_to_vmem [thread:$0]  (!%p1893_p11), %s1889_s30, 1024, %s1891_s6, %s1897_s7, %s1717_s11, %s1717_s11, %s1718_s12  }
  0x5e   : > { %207 = sbr.rel (%p1790_p8) target bundleno = 704 (0x2c0), region = 36  ;;  %s1931_s8 = sand.u32 (!%p1790_p8), 1, %s1705_s16  }
  0x5f   : > { %s1154_s10 = sshll.u32 (!%p1790_p8), %s1931_s8, 6  ;;  %s210_s24 = scalar_lea.sflag (!%p1790_p8), [#allocation5], %s1931_s8 }
  0x60   : > { %s1935_s28 = scalar_lea.vmem (!%p1790_p8), [#allocation4], %s1154_s10  ;;  %p2183_p4 = scmp.ne.s32.totalorder (!%p1790_p8), %s2176_s21, 0 }
  0x65   : > { %1688 = dma.done.wait (%p2183_p4), %s210_s24, 1024  }
  0x66   : > { %1690 = vsyncadd (%p2183_p4), %s210_s24, 4294966272  ;;  %p2184_p5 = scmp.eq.s32.totalorder %s1771_s19, 0 }
  0x68   : > { %1692 = dma.done.wait (%p2184_p5), [#allocation8], 3840   ;;  %p2185_p8 = pmov %p2184_p5 }
  0x69   : > { %vm277_vm0 = vcmask 261120   ;;  %v1720_v0 = vmov 0.0   ;;  %vm1721_vm1 = vmmov 0   ;;  %v1527_v1 = vld [vmem:[#allocation7 + $0x10] sm:$0xff]   ;;  %v1528_v2 = vld [vmem:[#allocation7 + $0x18] sm:$0xff]   ;;  %v1529_v39 = vld [vmem:[#allocation7] sm:$0xff]  }
  0x6a   : > { %1694 = vsyncadd (%p2185_p8), [#allocation8], 4294963456  ;;  %1262 = vmatprep.subr.bf16.mxu0 %v1720_v0  ;;  %590 = vst [vmem:[#allocation3] sm:$0xff] %v1720_v0  ;;  %1266 = vmatprep.mubr.msk.bf16.mxu0 %vm1721_vm1, %v1720_v0  ;;  %v249_v3 = vld [vmem:[%s1935_s28] sm:$0xf]  ;;  %v1533_v34 = vld [vmem:[#allocation9 + $0x40] sm:$0xff]  }
  0x6b   : > { %591 = vst [vmem:[#allocation3 + $0x8] sm:$0xff] %v1720_v0  ;;  %592 = vst [vmem:[#allocation3 + $0x10] sm:$0xff] %v1720_v0  ;;  %1310 = vmatprep.subr.bf16.mxu1 %v1720_v0  ;;  %1326 = vmatprep.mubr.msk.bf16.mxu1 %vm1721_vm1, %v1720_v0  ;;  %v250_v4 = vld [vmem:[%s1935_s28 + $0x4] sm:$0xf]  ;;  %v251_v5 = vld [vmem:[%s1935_s28 + $0x8] sm:$0xf] }
  0x6c   : > { %593 = vst [vmem:[#allocation3 + $0x18] sm:$0xff] %v1720_v0  ;;  %594 = vst [vmem:[#allocation3 + $0x20] sm:$0xff] %v1720_v0  ;;  %1263 = vmatpush3.bf16.msra.mxu0 %v1527_v1  ;;  %v252_v6 = vld [vmem:[%s1935_s28 + $0xc] sm:$0xf]  ;;  %v253_v7 = vld [vmem:[%s1935_s28 + $0x10] sm:$0xf]  ;;  %v265_v9 = vmax.bf16 %v250_v4, %v249_v3  ;;  %1311 = vmatpush3.bf16.msra.mxu1 %v1533_v34 }
  0x6d   : > { %595 = vst [vmem:[#allocation3 + $0x28] sm:$0xff] %v1720_v0  ;;  %278 = vst.msk [vmem:[#allocation2] sm:$0xff] %vm277_vm0, %v1720_v0  ;;  %1264 = vmatprep.subr.bf16.mxu0 %v1720_v0  ;;  %v254_v8 = vld [vmem:[%s1935_s28 + $0x14] sm:$0xf]  ;;  %v255_v10 = vld [vmem:[%s1935_s28 + $0x18] sm:$0xf]  ;;  %v269_v13 = vmax.bf16 %v252_v6, %v251_v5  ;;  %1312 = vmatprep.subr.bf16.mxu1 %v1720_v0 }
  0x6e   : > { %279 = vst.msk [vmem:[#allocation2 + $0x8] sm:$0xff] %vm277_vm0, %v1720_v0  ;;  %280 = vst.msk [vmem:[#allocation2 + $0x10] sm:$0xff] %vm277_vm0, %v1720_v0  ;;  %v256_v11 = vld [vmem:[%s1935_s28 + $0x1c] sm:$0xf]  ;;  %v266_v12 = vmax.bf16 %v254_v8, %v253_v7  ;;  %v257_v15 = vld [vmem:[%s1935_s28 + $0x20] sm:$0xf] }
  0x6f   : > { %281 = vst.msk [vmem:[#allocation2 + $0x18] sm:$0xff] %vm277_vm0, %v1720_v0  ;;  %282 = vst.msk [vmem:[#allocation2 + $0x20] sm:$0xff] %vm277_vm0, %v1720_v0  ;;  %v270_v14 = vmax.bf16 %v256_v11, %v255_v10  ;;  %v273_v16 = vmax.bf16 %v269_v13, %v265_v9  ;;  %v258_v17 = vld [vmem:[%s1935_s28 + $0x24] sm:$0xf]  ;;  %v259_v18 = vld [vmem:[%s1935_s28 + $0x28] sm:$0xf] }
  0x70   : > { %1265 = vmatpush3.bf16.msra.mxu0 %v1528_v2  ;;  %v260_v19 = vld [vmem:[%s1935_s28 + $0x2c] sm:$0xf]  ;;  %v261_v21 = vld [vmem:[%s1935_s28 + $0x30] sm:$0xf]  ;;  %v262_v22 = vld [vmem:[%s1935_s28 + $0x34] sm:$0xf]  ;;  %v267_v24 = vmax.bf16 %v258_v17, %v257_v15 }
  0x71   : > { %1278 = vmatprep.subr.bf16.mxu0 %v1720_v0  ;;  %v274_v20 = vmax.bf16 %v270_v14, %v266_v12  ;;  %v263_v23 = vld [vmem:[%s1935_s28 + $0x38] sm:$0xf]  ;;  %v271_v25 = vmax.bf16 %v260_v19, %v259_v18  ;;  %v283_v26 = vunpack.c.l.bf16 %v273_v16  ;;  %v264_v27 = vld [vmem:[%s1935_s28 + $0x3c] sm:$0xf]  ;;  %v268_v28 = vmax.bf16 %v262_v22, %v261_v21  ;;  %v1537_v41 = vld [vmem:[#allocation9 + $0x50] sm:$0xff]   ;;  %s1157_s27 = sshll.u32 %s1931_s8, 5 }
  0x72   : > { %v272_v30 = vmax.bf16 %v264_v27, %v263_v23  ;;  %v1535_v36 = vld [vmem:[#allocation9 + $0x48] sm:$0xff]   ;;  %v1530_v44 = vld [vmem:[#allocation7 + $0x8] sm:$0xff]   ;;  %v1531_v52 = vld [vmem:[#allocation7 + $0x20] sm:$0xff]   ;;  %s2109_s20 = scalar_lea.vmem [#allocation10], %s1157_s27  ;;  %s1213_s5 = sshll.u32 %s1771_s19, 9 }
  0x73   : > { %v285_v29 = vunpack.c.l.bf16 %v274_v20  ;;  %v275_v31 = vmax.bf16 %v271_v25, %v267_v24  ;;  %284 = vst.msk [vmem:[#allocation2 + $0x1] sm:$0xff] %vm277_vm0, %v283_v26  ;;  %1313 = vmatpush3.bf16.msra.mxu1 %v1535_v36  ;;  %v1539_v45 = vld [vmem:[#allocation9 + $0x58] sm:$0xff]   ;;  %v2015_v62 = vld [vmem:[#allocation9 + $0x80] sm:$0xff]   ;;  %v2021_v2 = vld [vmem:[#allocation9 + $0x88] sm:$0xff]   ;;  %s1052_s29 = sshll.u32 %s2109_s20, 4  ;;  %s2122_s24 = scalar_lea.hbm %s2172_s4, %s1213_s5  ;;  %s2117_s29 = int_to_ptr.vmem [resolvable:$true] %s1052_s29 }
  0x74   : > { %v276_v32 = vmax.bf16 %v272_v30, %v268_v28  ;;  %1314 = vmatprep.subr.bf16.mxu1 %v1720_v0  ;;  %v1532_v55 = vld [vmem:[#allocation7 + $0x28] sm:$0xff]   ;;  %v2025_v4 = vld [vmem:[#allocation9 + $0x90] sm:$0xff]   ;;  %v1541_v8 = vld [vmem:[#allocation9 + $0x60] sm:$0xff]   ;;  %s1039_s28 = scalar_lea.sflag [#allocation6], %s1931_s8  ;;  %s1643_s21 = scalar_lea.vmem %s2117_s29, 512 }
  0x75   : > { %286 = vst.msk [vmem:[#allocation2 + $0xb] sm:$0xff] %vm277_vm0, %v285_v29  ;;  %v287_v33 = vunpack.c.l.bf16 %v275_v31  ;;  %v2036_v7 = vld [vmem:[#allocation9 + $0x98] sm:$0xff]   ;;  %v2040_v9 = vld [vmem:[#allocation9 + $0xa0] sm:$0xff]   ;;  %v1543_v10 = vld [vmem:[#allocation9 + $0x68] sm:$0xff]   ;;  %p1644_p11 = scmp.ne.s32.totalorder %s2117_s29, %s1643_s21  ;;  %p2186_p0 = scmp.ne.s32.totalorder %s2181_s13, 0 }
  0x76   : > { %v289_v35 = vunpack.c.l.bf16 %v276_v32  ;;  %v2045_v11 = vld [vmem:[#allocation9 + $0xa8] sm:$0xff]   ;;  %v1545_v12 = vld [vmem:[#allocation9 + $0x70] sm:$0xff]   ;;  %v1547_v14 = vld [vmem:[#allocation9 + $0x78] sm:$0xff]   ;;  %s1722_s19 = smov [#allocation10]  }
  0x77   : > { %288 = vst.msk [vmem:[#allocation2 + $0x15] sm:$0xff] %vm277_vm0, %v287_v33  ;;  %1315 = vmatpush3.bf16.msra.mxu1 %v1537_v41  ;;  %v2050_v13 = vld [vmem:[#allocation9 + $0xb0] sm:$0xff]   ;;  %v2055_v15 = vld [vmem:[#allocation9 + $0xb8] sm:$0xff]   ;;  %p1645_p2 = pnand %p1644_p11, %p2186_p0  ;;  %s1647_s23 = sshll.u32 %s1722_s19, 4  ;;  %s1648_s23 = int_to_ptr.vmem [resolvable:$false] %s1647_s23 }
  0x78   : > { %290 = vst.msk [vmem:[#allocation2 + $0x1f] sm:$0xff] %vm277_vm0, %v289_v35  ;;  %1316 = vmatprep.subr.bf16.mxu1 %v1720_v0  ;;  %v1173_v16 = vld [vmem:[%s2171_s3] ss:$0 sm:$0xff]  ;;  %v1174_v17 = vld [vmem:[%s2171_s3 + $0x1] ss:$0 sm:$0xff]  ;;  %s1649_s11 = scalar_lea.vmem %s1648_s23, 1024  ;;  %p1650_p7 = scmp.lt.s32.totalorder %s2117_s29, %s1648_s23 }
  0x79   : > { %p1646_p3 = pneg %p1645_p2  ;;  %p1651_p9 = scmp.lt.s32.totalorder %s1649_s11, %s1643_s21 }
  0x7a   : > { %v305_v37 = vld [vmem:[#allocation2 + $0x1] sm:$0xff] }
  0x7b   : > { %1317 = vmatpush3.bf16.msra.mxu1 %v1539_v45  ;;  %v293_v49 = vld [vmem:[#allocation2] sm:$0xff]  ;;  %p1652_p12 = por %p1651_p9, %p1650_p7 }
  0x7c   : > { %v306_v38 = vld [vmem:[#allocation2 + $0x9] sm:$0xff]  ;;  %1318 = vmatprep.subr.bf16.mxu1 %v1720_v0 }
  0x7d   : > { %v310_v40 = vpack.c.bf16 %v306_v38, %v305_v37  ;;  %v294_v50 = vld [vmem:[#allocation2 + $0x8] sm:$0xff]  ;;  %p1653_p1 = pnand %p1652_p12, %p1646_p3 }
  0x7e   : > { %v307_v42 = vld [vmem:[#allocation2 + $0x11] sm:$0xff]  ;;  %v298_v51 = vpack.c.bf16 %v294_v50, %v293_v49  ;;  %v472_v59 = vld [vmem:[#allocation2 + $0x2] sm:$0xff] }
  0x7f   : > { %1267 = vmatmul.mubr.msk.bf16.vlgmr.msra.gmra.mrb[0].mxu0 %vm277_vm0, %v310_v40  ;;  %v308_v43 = vld [vmem:[#allocation2 + $0x19] sm:$0xff]  ;;  %v309_v47 = vld [vmem:[#allocation2 + $0x21] sm:$0x3f]  ;;  %v295_v53 = vld [vmem:[#allocation2 + $0x10] sm:$0xff]  ;;  %1319 = vmatpush3.bf16.msra.mxu1 %v1541_v8 }
  0x80   : > { %1279 = vmatpush3.bf16.msra.mxu0 %v1529_v39  ;;  %1270 = vmatprep.mubr.msk.bf16.mxu0 %vm1721_vm1, %v1720_v0  ;;  %v311_v46 = vpack.c.bf16 %v308_v43, %v307_v42  ;;  %v312_v48 = vpack.c.bf16 %v309_v47, %v309_v47  ;;  %v296_v54 = vld [vmem:[#allocation2 + $0x18] sm:$0xff]  ;;  %v297_v57 = vld [vmem:[#allocation2 + $0x20] sm:$0x3f]  ;;  %v473_v60 = vld [vmem:[#allocation2 + $0xa] sm:$0xff] }
  0x81   : > { %1280 = vmatprep.subr.bf16.mxu0 %v1720_v0  ;;  %v299_v56 = vpack.c.bf16 %v296_v54, %v295_v53  ;;  %v300_v58 = vpack.c.bf16 %v297_v57, %v297_v57  ;;  %v477_v61 = vpack.c.bf16 %v473_v60, %v472_v59  ;;  %v474_v63 = vld [vmem:[#allocation2 + $0x12] sm:$0xff]  ;;  %v475_v1 = vld [vmem:[#allocation2 + $0x1a] sm:$0xff]  ;;  %v476_v5 = vld [vmem:[#allocation2 + $0x22] sm:$0x3f]  ;;  %1320 = vmatprep.subr.bf16.mxu1 %v1720_v0 }
  0x82   : > { %v478_v3 = vpack.c.bf16 %v475_v1, %v474_v63  ;;  %v479_v6 = vpack.c.bf16 %v476_v5, %v476_v5  ;;  %v1549_v38 = vld [vmem:[#allocation9] sm:$0xff]   ;;  %v1550_v50 = vld [vmem:[#allocation9 + $0x8] sm:$0xff]   ;;  %v1551_v53 = vld [vmem:[#allocation9 + $0x10] sm:$0xff]  }
  0x83   : > { %1321 = vmatpush3.bf16.msra.mxu1 %v1543_v10  ;;  %v1552_v59 = vld [vmem:[#allocation9 + $0x18] sm:$0xff]   ;;  %v1553_v63 = vld [vmem:[#allocation9 + $0x20] sm:$0xff]   ;;  %v1555_v5 = vld [vmem:[#allocation9 + $0x30] sm:$0xff]  }
  0x84   : > { %1281 = vmatpush3.bf16.msra.mxu0 %v1530_v44  ;;  %1322 = vmatprep.subr.bf16.mxu1 %v1720_v0 }
  0x85   : > { %1294 = vmatprep.subr.bf16.mxu0 %v1720_v0 }
  0x87   : > { %1271 = vmatmul.mubr.msk.bf16.gmra.mrb[4].mxu0 %vm277_vm0, %v311_v46  ;;  %1323 = vmatpush3.bf16.msra.mxu1 %v1545_v12 }
  0x88   : > { %1274 = vmatprep.mubr.msk.bf16.mxu0 %vm1721_vm1, %v1720_v0  ;;  %1324 = vmatprep.subr.bf16.mxu1 %v1720_v0 }
  0x8b   : > { %1325 = vmatpush3.bf16.msra.mxu1 %v1547_v14 }
  0x8c   : > { %1338 = vmatprep.subr.bf16.mxu1 %v1720_v0 }
  0x8f   : > { %1275 = vmatmul.mubr.msk.bf16.gmra.mrb[8].mxu0 %vm277_vm0, %v312_v48 }
  0x90   : > { %1282 = vmatprep.mubr.msk.bf16.mxu0 %vm1721_vm1, %v1720_v0 }
  0x97   : > { %1283 = vmatmul.mubr.msk.bf16.vlgmr.msra.gmra.mrb[0].mxu0 %vm277_vm0, %v298_v51 }
  0x98   : > { %1295 = vmatpush3.bf16.msra.mxu0 %v1531_v52  ;;  %1286 = vmatprep.mubr.msk.bf16.mxu0 %vm1721_vm1, %v1720_v0 }
  0x99   : > { %1296 = vmatprep.subr.bf16.mxu0 %v1720_v0 }
  0x9c   : > { %1297 = vmatpush3.bf16.msra.mxu0 %v1532_v55 }
  0x9d   : > { %1366 = vmatprep.subr.bf16.mxu0 %v1720_v0 }
  0x9f   : > { %1287 = vmatmul.mubr.msk.bf16.gmra.mrb[4].mxu0 %vm277_vm0, %v299_v56 }
  0xa0   : > { %1290 = vmatprep.mubr.msk.bf16.mxu0 %vm1721_vm1, %v1720_v0 }
  0xa7   : > { %1291 = vmatmul.mubr.msk.bf16.gmra.mrb[8].mxu0 %vm277_vm0, %v300_v58 }
  0xa8   : > { %1298 = vmatprep.mubr.msk.bf16.mxu0 %vm1721_vm1, %v1720_v0 }
  0xaf   : > { %1299 = vmatmul.mubr.msk.bf16.vlgmr.msra.gmra.mrb[0].mxu0 %vm277_vm0, %v477_v61 }
  0xb0   : > { %1302 = vmatprep.mubr.msk.bf16.mxu0 %vm1721_vm1, %v1720_v0  ;;  %1367 = vmatpush3.bf16.msra.mxu0 %v2015_v62 }
  0xb1   : > { %1368 = vmatprep.subr.bf16.mxu0 %v1720_v0 }
  0xb4   : > { %1369 = vmatpush3.bf16.msra.mxu0 %v2021_v2 }
  0xb5   : > { %1370 = vmatprep.subr.bf16.mxu0 %v1720_v0 }
  0xb7   : > { %1303 = vmatmul.mubr.msk.bf16.gmra.mrb[4].mxu0 %vm277_vm0, %v478_v3  ;;  %v1554_v3 = vld [vmem:[#allocation9 + $0x28] sm:$0xff]  }
  0xb8   : > { %1306 = vmatprep.mubr.msk.bf16.mxu0 %vm1721_vm1, %v1720_v0  ;;  %1371 = vmatpush3.bf16.msra.mxu0 %v2025_v4 }
  0xb9   : > { %1372 = vmatprep.subr.bf16.mxu0 %v1720_v0 }
  0xbc   : > { %1373 = vmatpush3.bf16.msra.mxu0 %v2036_v7 }
  0xbd   : > { %1374 = vmatprep.subr.bf16.mxu0 %v1720_v0 }
  0xbf   : > { %1307 = vmatmul.mubr.msk.bf16.gmra.mrb[8].mxu0 %vm277_vm0, %v479_v6  ;;  %v1556_v6 = vld [vmem:[#allocation9 + $0x38] sm:$0xff]  }
  0xc0   : > { %1382 = vmatprep.mubr.msk.bf16.mxu0 %vm1721_vm1, %v1720_v0  ;;  %1375 = vmatpush3.bf16.msra.mxu0 %v2040_v9 }
  0xc1   : > { %1376 = vmatprep.subr.bf16.mxu0 %v1720_v0 }
  0xc4   : > { %1377 = vmatpush3.bf16.msra.mxu0 %v2045_v11 }
  0xc5   : > { %1378 = vmatprep.subr.bf16.mxu0 %v1720_v0 }
  0xc8   : > { %1379 = vmatpush3.bf16.msra.mxu0 %v2050_v13 }
  0xc9   : > { %1380 = vmatprep.subr.bf16.mxu0 %v1720_v0 }
  0xcc   : > { %1381 = vmatpush3.bf16.msra.mxu0 %v2055_v15 }
 0x182   : > { %v540_v18 = vpop.f32.mrb[0].mxu0 }
 0x183   : > { %v571_v19 = vmul.f32 %v1173_v16, %v540_v18  ;;  %v1300_v20 = vpop.f32.mrb[1].mxu0 }
 0x184   : > { %v543_v21 = vpop.f32.mrb[2].mxu0 }
 0x185   : > { %v580_v22 = vadd.f32 %v1174_v17, %v571_v19  ;;  %v572_v23 = vmul.f32 %v1173_v16, %v543_v21  ;;  %v1301_v24 = vpop.f32.mrb[3].mxu0 }
 0x187   : > { %v585_v25 = vmax.f32 %v580_v22, 0.0  ;;  %v581_v26 = vadd.f32 %v1174_v17, %v572_v23 }
 0x189   : > { %596 = vst [vmem:[#allocation3 + $0x2] sm:$0xff] %v585_v25  ;;  %v586_v27 = vmax.f32 %v581_v26, 0.0 }
 0x18a   : > { %v548_v28 = vpop.f32.mrb[4].mxu0 }
 0x18b   : > { %597 = vst [vmem:[#allocation3 + $0xc] sm:$0xfc] %v586_v27  ;;  %v573_v29 = vmul.f32 %v1173_v16, %v548_v28  ;;  %v1304_v30 = vpop.f32.mrb[5].mxu0 }
 0x18c   : > { %v551_v31 = vpop.f32.mrb[6].mxu0 }
 0x18d   : > { %v582_v32 = vadd.f32 %v1174_v17, %v573_v29  ;;  %v574_v33 = vmul.f32 %v1173_v16, %v551_v31  ;;  %v1305_v34 = vpop.f32.mrb[7].mxu0 }
 0x18f   : > { %v587_v35 = vmax.f32 %v582_v32, 0.0  ;;  %v583_v36 = vadd.f32 %v1174_v17, %v574_v33 }
 0x190   : > { %v866_v41 = vld [vmem:[#allocation3 + $0x4] sm:$0xff] }
 0x191   : > { %598 = vst [vmem:[#allocation3 + $0x14] ss:$6 sps:$4 sm:$0xf3] %v587_v35   ;;  %v588_v37 = vmax.f32 %v583_v36, 0.0  ;;  %v605_v10 = vld [vmem:[#allocation3] sm:$0xff] }
 0x192   : > { %v556_v39 = vpop.f32.mrb[8].mxu0  ;;  %v631_v40 = vld [vmem:[#allocation3 + $0xa] sm:$0xff] }
 0x193   : > { %v867_v42 = vld [vmem:[#allocation3 + $0xc] sm:$0xff]  ;;  %600 = vst [vmem:[#allocation3 + $0x1e] ss:$6 sps:$4 sm:$0xcf] %v588_v37   ;;  %v575_v43 = vmul.f32 %v1173_v16, %v556_v39  ;;  %v1308_v44 = vpop.f32.mrb[9].mxu0  ;;  %v636_v45 = vpack.c.bf16 %v631_v40, %v585_v25 }
 0x194   : > { %v872_v46 = vpack.c.bf16 %v867_v42, %v866_v41  ;;  %v559_v47 = vpop.f32.mrb[10].mxu0  ;;  %v606_v8 = vld [vmem:[#allocation3 + $0x8] sm:$0xff] }
 0x195   : > { %v584_v48 = vadd.f32 %v1174_v17, %v575_v43  ;;  %v1309_v49 = vpop.f32.mrb[11].mxu0  ;;  %1327 = vmatmul.mubr.bf16.vlgmr.msra.gmra.mrb[0].mxu1 %v636_v45  ;;  %v611_v12 = vpack.c.bf16 %v606_v8, %v605_v10 }
 0x196   : > { %1383 = vmatmul.mubr.bf16.vlgmr.msra.gmra.mrb[12].mxu0 %v872_v46  ;;  %1339 = vmatpush3.bf16.msra.mxu1 %v1549_v38 }
 0x197   : > { %1330 = vmatprep.mubr.msk.bf16.mxu1 %vm1721_vm1, %v1720_v0  ;;  %v589_v51 = vmax.f32 %v584_v48, 0.0  ;;  %1340 = vmatprep.subr.bf16.mxu1 %v1720_v0 }
 0x198   : > { %1386 = vmatprep.mubr.msk.bf16.mxu0 %vm1721_vm1, %v1720_v0  ;;  %v632_v52 = vld [vmem:[#allocation3 + $0x12] sm:$0xff] }
 0x199   : > { %602 = vst [vmem:[#allocation3 + $0x28] sm:$0x3f] %v589_v51  ;;  %v868_v55 = vld [vmem:[#allocation3 + $0x14] sm:$0xff] }
 0x19a   : > { %1341 = vmatpush3.bf16.msra.mxu1 %v1550_v50  ;;  %v633_v54 = vld [vmem:[#allocation3 + $0x1a] sm:$0xff]  ;;  %v607_v16 = vld [vmem:[#allocation3 + $0x10] sm:$0xff] }
 0x19b   : > { %v869_v56 = vld [vmem:[#allocation3 + $0x1c] sm:$0xff]  ;;  %1342 = vmatprep.subr.bf16.mxu1 %v1720_v0  ;;  %v637_v57 = vpack.c.bf16 %v633_v54, %v632_v52 }
 0x19c   : > { %v873_v58 = vpack.c.bf16 %v869_v56, %v868_v55  ;;  %v608_v14 = vld [vmem:[#allocation3 + $0x18] sm:$0xff]  ;;  %v609_v18 = vld [vmem:[#allocation3 + $0x20] sm:$0xff] }
 0x19d   : > { %1331 = vmatmul.mubr.bf16.gmra.mrb[4].mxu1 %v637_v57  ;;  %v612_v17 = vpack.c.bf16 %v608_v14, %v607_v16 }
 0x19e   : > { %1387 = vmatmul.mubr.bf16.gmra.mrb[16].mxu0 %v873_v58  ;;  %1343 = vmatpush3.bf16.msra.mxu1 %v1551_v53 }
 0x19f   : > { %1334 = vmatprep.mubr.msk.bf16.mxu1 %vm1721_vm1, %v1720_v0  ;;  %1344 = vmatprep.subr.bf16.mxu1 %v1720_v0 }
 0x1a0   : > { %v634_v60 = vld [vmem:[#allocation3 + $0x22] sm:$0xff]  ;;  %v635_v61 = vld [vmem:[#allocation3 + $0x2a] sm:$0xf] }
 0x1a1   : > { %v638_v1 = vpack.c.bf16 %v635_v61, %v634_v60 }
 0x1a2   : > { %1345 = vmatpush3.bf16.msra.mxu1 %v1552_v59 }
 0x1a3   : > { %1346 = vmatprep.subr.bf16.mxu1 %v1720_v0 }
 0x1a5   : > { %1335 = vmatmul.mubr.bf16.gmra.mrb[8].mxu1 %v638_v1 }
 0x1a6   : > { %1347 = vmatpush3.bf16.msra.mxu1 %v1553_v63  ;;  %1354 = vmatprep.mubr.msk.bf16.mxu1 %vm1721_vm1, %v1720_v0 }
 0x1a7   : > { %1348 = vmatprep.subr.bf16.mxu1 %v1720_v0 }
 0x1aa   : > { %1349 = vmatpush3.bf16.msra.mxu1 %v1554_v3 }
 0x1ab   : > { %1350 = vmatprep.subr.bf16.mxu1 %v1720_v0 }
 0x1ae   : > { %1351 = vmatpush3.bf16.msra.mxu1 %v1555_v5 }
 0x1af   : > { %1352 = vmatprep.subr.bf16.mxu1 %v1720_v0 }
 0x1b2   : > { %1353 = vmatpush3.bf16.msra.mxu1 %v1556_v6 }
 0x1b3   : > { %1394 = vmatprep.subr.bf16.mxu1 %v1720_v0 }
 0x1b5   : > { %1355 = vmatmul.mubr.bf16.vlgmr.msra.gmra.mrb[0].mxu1 %v611_v12 }
 0x1b6   : > { %1402 = vmatpush3.bf16.msra.mxu1 %v2015_v62  ;;  %1358 = vmatprep.mubr.msk.bf16.mxu1 %vm1721_vm1, %v1720_v0  ;;  %v610_v62 = vld [vmem:[#allocation3 + $0x28] sm:$0xf] }
 0x1b7   : > { %1395 = vmatprep.subr.bf16.mxu1 %v1720_v0  ;;  %v613_v19 = vpack.c.bf16 %v610_v62, %v609_v18 }
 0x1ba   : > { %1403 = vmatpush3.bf16.msra.mxu1 %v2021_v2  ;;  %v870_v2 = vld [vmem:[#allocation3 + $0x24] sm:$0xff] }
 0x1bb   : > { %1396 = vmatprep.subr.bf16.mxu1 %v1720_v0 }
 0x1bd   : > { %1359 = vmatmul.mubr.bf16.gmra.mrb[4].mxu1 %v612_v17 }
 0x1be   : > { %1404 = vmatpush3.bf16.msra.mxu1 %v2025_v4  ;;  %1362 = vmatprep.mubr.msk.bf16.mxu1 %vm1721_vm1, %v1720_v0  ;;  %v871_v4 = vld [vmem:[#allocation3 + $0x2c] sm:$0xf] }
 0x1bf   : > { %1397 = vmatprep.subr.bf16.mxu1 %v1720_v0 }
 0x1c2   : > { %1405 = vmatpush3.bf16.msra.mxu1 %v2036_v7  ;;  %v874_v7 = vpack.c.bf16 %v871_v4, %v870_v2 }
 0x1c3   : > { %1398 = vmatprep.subr.bf16.mxu1 %v1720_v0 }
 0x1c5   : > { %1363 = vmatmul.mubr.bf16.gmra.mrb[8].mxu1 %v613_v19 }
 0x1c6   : > { %1406 = vmatpush3.bf16.msra.mxu1 %v2040_v9  ;;  %1390 = vmatprep.mubr.msk.bf16.mxu1 %vm1721_vm1, %v1720_v0 }
 0x1c7   : > { %1399 = vmatprep.subr.bf16.mxu1 %v1720_v0 }
 0x1ca   : > { %1407 = vmatpush3.bf16.msra.mxu1 %v2045_v11 }
 0x1cb   : > { %1400 = vmatprep.subr.bf16.mxu1 %v1720_v0 }
 0x1ce   : > { %1408 = vmatpush3.bf16.msra.mxu1 %v2050_v13  ;;  %v1199_v13 = vld [vmem:[%s2171_s3 + $0x2] ss:$0 sm:$0xff] }
 0x1cf   : > { %1401 = vmatprep.subr.bf16.mxu1 %v1720_v0 }
 0x1d2   : > { %1409 = vmatpush3.bf16.msra.mxu1 %v2055_v15  ;;  %v1200_v15 = vld [vmem:[%s2171_s3 + $0x3] ss:$0 sm:$0xff] }
 0x1d5   : > { %1391 = vmatmul.mubr.bf16.vlgmr.msra.gmra.mrb[8].mxu1 %v874_v7 }
 0x269   : > { %v974_v9 = vpop.f32.mrb[12].mxu0 }
 0x26a   : > { %v1384_v20 = vpop.f32.mrb[13].mxu0 }
 0x26b   : > { %v977_v21 = vpop.f32.mrb[14].mxu0 }
 0x26c   : > { %v1385_v22 = vpop.f32.mrb[15].mxu0 }
 0x271   : > { %v982_v23 = vpop.f32.mrb[16].mxu0 }
 0x272   : > { %v1388_v24 = vpop.f32.mrb[17].mxu0 }
 0x273   : > { %v985_v11 = vpop.f32.mrb[18].mxu0 }
 0x274   : > { %v1389_v25 = vpop.f32.mrb[19].mxu0 }
 0x288   : > { %v843_v0 = vpop.f32.mrb[0].mxu1 }
 0x289   : > { %v1410_v26 = vadd.f32 %v974_v9, %v843_v0  ;;  %v1356_v27 = vpop.f32.mrb[1].mxu1 }
 0x28a   : > { %v846_v28 = vpop.f32.mrb[2].mxu1 }
 0x28b   : > { %v1007_v29 = vmul.f32 %v1410_v26, %v1199_v13  ;;  %v1411_v30 = vadd.f32 %v977_v21, %v846_v28  ;;  %v1357_v31 = vpop.f32.mrb[3].mxu1 }
 0x28d   : > { %v1017_v32 = vadd.f32 %v1200_v15, %v1007_v29  ;;  %v1008_v33 = vmul.f32 %v1411_v30, %v1199_v13 }
 0x28f   : > { %v1023_v34 = vmax.f32 %v1017_v32, 0.0  ;;  %v1018_v35 = vadd.f32 %v1200_v15, %v1008_v33 }
 0x290   : > { %v851_v36 = vpop.f32.mrb[4].mxu1 }
 0x291   : > { %1029 = vst [vmem:[%s2109_s20] sm:$0xff] %v1023_v34  ;;  %v1024_v37 = vmax.f32 %v1018_v35, 0.0  ;;  %v1412_v38 = vadd.f32 %v982_v23, %v851_v36  ;;  %v1360_v39 = vpop.f32.mrb[5].mxu1 }
 0x292   : > { %v854_v40 = vpop.f32.mrb[6].mxu1 }
 0x293   : > { %1201 = vst [vmem:[%s2109_s20 + $0x4] sm:$0xf0] %v1024_v37  ;;  %v1009_v41 = vmul.f32 %v1412_v38, %v1199_v13  ;;  %v1413_v42 = vadd.f32 %v985_v11, %v854_v40  ;;  %v1361_v43 = vpop.f32.mrb[7].mxu1 }
 0x295   : > { %v1019_v44 = vadd.f32 %v1200_v15, %v1009_v41  ;;  %v1010_v45 = vmul.f32 %v1413_v42, %v1199_v13 }
 0x297   : > { %v1025_v46 = vmax.f32 %v1019_v44, 0.0  ;;  %v1020_v47 = vadd.f32 %v1200_v15, %v1010_v45 }
 0x299   : > { %1202 = vst [vmem:[%s2109_s20 + $0xc] sm:$0xf] %v1025_v46  ;;  %v1026_v48 = vmax.f32 %v1020_v47, 0.0 }
 0x29b   : > { %1203 = vst [vmem:[%s2109_s20 + $0x10] sm:$0xff] %v1026_v48 }
 0x2a8   : > { %v990_v49 = vpop.f32.mrb[8].mxu1 }
 0x2a9   : > { %v1011_v50 = vmul.f32 %v1199_v13, %v990_v49  ;;  %v1392_v51 = vpop.f32.mrb[9].mxu1 }
 0x2aa   : > { %v993_v52 = vpop.f32.mrb[10].mxu1 }
 0x2ab   : > { %v1021_v53 = vadd.f32 %v1200_v15, %v1011_v50  ;;  %v1012_v54 = vmul.f32 %v1199_v13, %v993_v52  ;;  %v1393_v55 = vpop.f32.mrb[11].mxu1 }
 0x2ad   : > { %v1027_v56 = vmax.f32 %v1021_v53, 0.0  ;;  %v1022_v57 = vadd.f32 %v1200_v15, %v1012_v54 }
 0x2af   : > { %1204 = vst [vmem:[%s2109_s20 + $0x14] sm:$0xf0] %v1027_v56  ;;  %v1028_v58 = vmax.f32 %v1022_v57, 0.0 }
 0x2b1   : > { %1205 = vst [vmem:[%s2109_s20 + $0x1c] sm:$0xf] %v1028_v58 }
 0x2b2   : > { %1656 = shalt.err (!%p1653_p1)
}
 0x2b3   : > { %s1657_s12 = scalar_lea.hbm %s2122_s24, 512  ;;  %s1661_s25 = scalar_lea.hbm %s2172_s4, 1024 }
 0x2b4   : > { %p1658_p13 = scmp.ne.s32.totalorder %s2122_s24, %s1657_s12  ;;  %p1662_p4 = scmp.lt.u32.totalorder %s2122_s24, %s2172_s4 }
 0x2b5   : > { %p1663_p5 = scmp.lt.u32.totalorder %s1661_s25, %s1657_s12  ;;  %p1665_p11 = scmp.lt.u32.totalorder %s1657_s12, %s2122_s24 }
 0x2b6   : > { %p1659_p6 = pnand %p1658_p13, %p2186_p0 }
 0x2b7   : > { %p1664_p8 = por %p1663_p5, %p1662_p4 }
 0x2b8   : > { %p1660_p10 = pneg %p1659_p6 }
 0x2b9   : > { %p1666_p2 = por %p1665_p11, %p1664_p8 }
 0x2bb   : > { %p1667_p3 = pnand %p1666_p2, %p1660_p10 }
 0x2bd   : > { %1670 = shalt.err (!%p1667_p3)
}
 0x2be   : > { %s1723_s20 = smov 128   ;;  %s1724_s5 = smov 8  }
 0x2bf   : > { %1464 = dma.vmem_to_hbm [thread:$0]  (%p2186_p0), %s2117_s29, 512, %s2122_s24, %s1039_s28, %s1723_s20, %s1723_s20, %s1724_s5  }
 0x2c0 PF: > { %s1067_s9 = sand.u32 1, %s1701_s15   ;;  %p2187_p7 = scmp.ne.s32.totalorder %s2177_s22, 0 }
 0x2c1   : > { %p2188_p9 = scmp.ge.s32.totalorder %s1713_s18, 2  ;;  %s1068_s10 = scalar_lea.sflag [#allocation6], %s1067_s9 }
 0x2c3   : > { %p1478_p12 = pnand %p2188_p9, %p2187_p7 }
 0x2c5   : > { %1696 = dma.done.wait (!%p1478_p12), %s1068_s10, 512  }
 0x2c6   : > { %1698 = vsyncadd (!%p1478_p12), %s1068_s10, 4294966784  ;;  %p18_p1 = scmp.ge.s32.totalorder %s1866_s26, 4   ;;  %s2189_s15 = smov %s1705_s16 }
 0x2c7   : > { %s2190_s16 = smov %s1709_s17  ;;  %s2191_s17 = smov %s1882_s14 }
 0x2c8   : > { %s2192_s18 = smov %s1866_s26  ;;  %20 = sbr.rel (!%p18_p1) target bundleno = 6 (0x6), region = 96 }
 0x2cf   :  { %1073 = vsyncpa [#allocation5], 1 }
 0x2d0   :  { %1075 = vsyncpa [#allocation5 + $0x1], 1 }
 0x2d1   :  { %1076 = vsyncpa [#allocation8], 1 }
 0x2d2   :  { %1077 = vsyncpa [#allocation6], 1 }
 0x2d3   :  { %1079 = vsyncpa [#allocation6 + $0x1], 1 }

</bundles_post_ra>
